<compile_context>
chip_gen: v7x
topology: tpu7x:2x2x1
jax: 0.10.0
libtpu: 0.0.40
codegen_flags: <defaults>
</compile_context>

<pallas_src>
import jax
import jax.numpy as jnp
from jax.experimental import pallas as pl
from jax.experimental.pallas import tpu as pltpu

D_MODEL = 512
EPS = 1e-5  # nn.LayerNorm default


# ---------------------------------------------------------------------------
# Kernels
# ---------------------------------------------------------------------------
def _addnorm_epilogue(s, gb_ref, o_ref):
    # One-pass mean / mean-of-squares: the two row reductions are independent
    # (XLU slot) and var = E[s^2] - mean^2 avoids a second full-tile VPU pass.
    mean = jnp.mean(s, axis=-1, keepdims=True)
    var = jnp.mean(s * s, axis=-1, keepdims=True) - mean * mean
    var = jnp.maximum(var, 0.0)                      # guard fp cancellation
    inv = jax.lax.rsqrt(var + EPS)                   # EUP slot (free vs. VPU)
    g = gb_ref[0:1, :]
    b = gb_ref[1:2, :]
    o_ref[...] = ((s - mean) * (inv * g) + b).astype(o_ref.dtype)


def addnorm_kernel(x_ref, r_ref, gb_ref, o_ref):
    # x_ref/r_ref/o_ref: (tm, D) tile; gb_ref: (2, D) = [gamma; beta] resident.
    s = x_ref[...].astype(jnp.float32) + r_ref[...].astype(jnp.float32)
    _addnorm_epilogue(s, gb_ref, o_ref)


def proj_addnorm_kernel(ctx_ref, r_ref, w_ref, gbb_ref, o_ref):
    # out = LayerNorm(residual + ctx @ W + bias); gbb_ref = [gamma; beta; bias].
    proj = jnp.dot(ctx_ref[...], w_ref[...], preferred_element_type=jnp.float32)
    s = proj + gbb_ref[2:3, :] + r_ref[...].astype(jnp.float32)
    _addnorm_epilogue(s, gbb_ref, o_ref)


# ---------------------------------------------------------------------------
# Tiling / VMEM heuristics
# ---------------------------------------------------------------------------
def _round_up(x, m):
    return (x + m - 1) // m * m


def _sublane(dtype):
    # f32 vreg tile is (8,128); sub-32-bit dtypes pack along sublanes -> (16,128).
    return 16 if jnp.dtype(dtype).itemsize <= 2 else 8


def _default_tm_max():
    # v5e/v6e (128 MiB VMEM) can afford bigger tiles; v7x (64 MiB) capped at 1024.
    try:
        if pltpu.get_tpu_info().vmem_capacity_bytes >= (100 << 20):
            return 2048
    except Exception:
        pass
    return 1024


def _choose_tm(rows, dtype, *, tm_max=None, target_steps=8):
    # Aim for >= target_steps pipelined grid steps (>= 4 per v7x TC) before
    # maximizing tm; tiles >= ~512 rows already sit at ~85% of HBM roofline so
    # the cost of the smaller tiles is ~1%. Tiny inputs fall back to 1-2 steps.
    sub = _sublane(dtype)
    if tm_max is None:
        tm_max = _default_tm_max()
    tm_max = max(sub, (tm_max // sub) * sub)
    max_steps = pl.cdiv(rows, sub)           # most steps possible at minimum tile
    g = min(target_steps, max_steps)
    if g > 1 and g % 2 == 1 and g + 1 <= max_steps:
        g += 1                               # even block count -> balanced v7x TCs
    tm = _round_up(pl.cdiv(rows, g), sub)
    return max(sub, min(tm, tm_max))


def _vmem_limit(num_streams, tm, d, io_itemsize, resident_bytes):
    # Double-buffered streaming tiles + resident params, 2x headroom for
    # compiler scratch; floor 16 MiB (<= every scoped default), cap 32 MiB
    # (safe on v7x's 64 MiB physical VMEM).
    tiles = 2 * num_streams * tm * d * io_itemsize
    need = 2 * (tiles + resident_bytes)
    return int(min(32 << 20, max(16 << 20, need)))


# ---------------------------------------------------------------------------
# Wrappers
# ---------------------------------------------------------------------------
def add_norm(x, residual, gamma, beta, *, tm=None, vmem_limit_bytes=None):
    """out = LayerNorm(x + residual) over the trailing d_model axis."""
    B, S, D = x.shape
    assert gamma.shape[-1] == D and beta.shape[-1] == D
    rows = B * S
    sub = _sublane(x.dtype)
    tm = _choose_tm(rows, x.dtype) if tm is None else max(sub, _round_up(tm, sub))
    grid = pl.cdiv(rows, tm)                 # masked tail block handles rows % tm

    x2 = x.reshape(rows, D)
    r2 = residual.reshape(rows, D)
    gb = jnp.stack([gamma.astype(jnp.float32).reshape(D),
                    beta.astype(jnp.float32).reshape(D)], axis=0)

    if vmem_limit_bytes is None:
        vmem_limit_bytes = _vmem_limit(3, tm, D, x.dtype.itemsize, int(gb.size) * 4)

    # NOTE: pipeline_mode=pl.Buffered(3) on the x/residual specs is a candidate
    # sweep for bf16 I/O on v7x; kept at the default depth here.
    out = pl.pallas_call(
        addnorm_kernel,
        out_shape=jax.ShapeDtypeStruct((rows, D), x.dtype),
        grid_spec=pltpu.PrefetchScalarGridSpec(
            num_scalar_prefetch=0,
            grid=(grid,),
            in_specs=[
                pl.BlockSpec((tm, D), lambda i: (i, 0)),
                pl.BlockSpec((tm, D), lambda i: (i, 0)),
                pl.BlockSpec((2, D), lambda i: (0, 0)),     # resident gamma/beta
            ],
            out_specs=pl.BlockSpec((tm, D), lambda i: (i, 0)),
        ),
        compiler_params=pltpu.CompilerParams(
            dimension_semantics=("parallel",),
            vmem_limit_bytes=vmem_limit_bytes,
        ),
    )(x2, r2, gb)
    return out.reshape(B, S, D)


def proj_add_norm(ctx, w, bias, residual, gamma, beta, *, tm=None,
                  vmem_limit_bytes=None):
    """out = LayerNorm(residual + ctx @ w.T + bias).

    Fuses MultiHeadAttn's output projection (nn.Linear W, weight shape (D, D))
    with the AddNorm that follows it in DecoderBlock.
    """
    B, S, D = ctx.shape
    assert w.shape == (D, D) and bias.shape[-1] == D
    rows = B * S
    sub = _sublane(ctx.dtype)
    tm = _choose_tm(rows, ctx.dtype) if tm is None else max(sub, _round_up(tm, sub))
    grid = pl.cdiv(rows, tm)

    ctx2 = ctx.reshape(rows, D)
    r2 = residual.reshape(rows, D)
    wt = jnp.asarray(w, dtype=ctx.dtype).T            # (in, out) so ctx @ wt = ctx @ w.T
    gbb = jnp.stack([gamma.astype(jnp.float32).reshape(D),
                     beta.astype(jnp.float32).reshape(D),
                     bias.astype(jnp.float32).reshape(D)], axis=0)

    if vmem_limit_bytes is None:
        resident = int(wt.size) * wt.dtype.itemsize + int(gbb.size) * 4
        vmem_limit_bytes = _vmem_limit(3, tm, D, ctx.dtype.itemsize, resident)

    out = pl.pallas_call(
        proj_addnorm_kernel,
        out_shape=jax.ShapeDtypeStruct((rows, D), ctx.dtype),
        grid_spec=pltpu.PrefetchScalarGridSpec(
            num_scalar_prefetch=0,
            grid=(grid,),
            in_specs=[
                pl.BlockSpec((tm, D), lambda i: (i, 0)),    # attention-context tile
                pl.BlockSpec((tm, D), lambda i: (i, 0)),    # residual tile
                pl.BlockSpec((D, D), lambda i: (0, 0)),     # resident projection weight
                pl.BlockSpec((3, D), lambda i: (0, 0)),     # resident gamma/beta/bias
            ],
            out_specs=pl.BlockSpec((tm, D), lambda i: (i, 0)),
        ),
        compiler_params=pltpu.CompilerParams(
            dimension_semantics=("parallel",),
            vmem_limit_bytes=vmem_limit_bytes,
        ),
    )(ctx2, r2, wt, gbb)
    return out.reshape(B, S, D)


# ---------------------------------------------------------------------------
# Pure-JAX references
# ---------------------------------------------------------------------------
def add_norm_ref(x, residual, gamma, beta):
    s = x.astype(jnp.float32) + residual.astype(jnp.float32)
    mean = jnp.mean(s, axis=-1, keepdims=True)
    var = jnp.mean((s - mean) ** 2, axis=-1, keepdims=True)
    y = (s - mean) * jax.lax.rsqrt(var + EPS) * gamma.astype(jnp.float32) \
        + beta.astype(jnp.float32)
    return y.astype(x.dtype)


def proj_add_norm_ref(ctx, w, bias, residual, gamma, beta):
    proj = (jnp.dot(ctx.astype(jnp.float32), w.astype(jnp.float32).T)
            + bias.astype(jnp.float32))
    s = proj + residual.astype(jnp.float32)
    mean = jnp.mean(s, axis=-1, keepdims=True)
    var = jnp.mean((s - mean) ** 2, axis=-1, keepdims=True)
    y = (s - mean) * jax.lax.rsqrt(var + EPS) * gamma.astype(jnp.float32) \
        + beta.astype(jnp.float32)
    return y.astype(ctx.dtype)


if __name__ == "__main__":
    key = jax.random.PRNGKey(0)
    kx, kr, kc, kw, kb = jax.random.split(key, 5)

    B, S, D = 2, 8, D_MODEL
    x = jax.random.normal(kx, (B, S, D), dtype=jnp.float32)
    residual = jax.random.normal(kr, (B, S, D), dtype=jnp.float32)

    # nn.LayerNorm default parameter init: weight=1, bias=0 (deterministic).
    gamma = jnp.ones((D,), dtype=jnp.float32)
    beta = jnp.zeros((D,), dtype=jnp.float32)

    # 1) small f32 AddNorm (tiny-input path still gets grid=2 for the 2 v7x TCs)
    out = jax.block_until_ready(add_norm(x, residual, gamma, beta))
    ref = add_norm_ref(x, residual, gamma, beta)
    assert out.shape == (B, S, D)
    assert jnp.allclose(out, ref, atol=1e-4, rtol=1e-4)

    # 2) non-divisible row count with a forced small tile -> masked tail block
    B2, S2 = 2, 100
    x2 = jax.random.normal(kc, (B2, S2, D), dtype=jnp.float32)
    r2 = jax.random.normal(kr, (B2, S2, D), dtype=jnp.float32)
    out2 = jax.block_until_ready(add_norm(x2, r2, gamma, beta, tm=64))
    ref2 = add_norm_ref(x2, r2, gamma, beta)
    assert jnp.allclose(out2, ref2, atol=1e-4, rtol=1e-4)

    # 3) bf16 I/O (tm rounded to the 16-row sublane tile); f32 accumulation inside
    xb = x.astype(jnp.bfloat16)
    rb = residual.astype(jnp.bfloat16)
    outb = jax.block_until_ready(add_norm(xb, rb, gamma, beta))
    refb = add_norm_ref(xb, rb, gamma, beta)
    assert outb.dtype == jnp.bfloat16
    assert jnp.allclose(outb.astype(jnp.float32), refb.astype(jnp.float32),
                        atol=3e-2, rtol=3e-2)

    # 4) fused output-projection + AddNorm (attn1 -> addnorm1 of DecoderBlock)
    w = jax.random.normal(kw, (D, D), dtype=jnp.float32) / jnp.sqrt(jnp.float32(D))
    bias = jax.random.normal(kb, (D,), dtype=jnp.float32) * 0.1
    ctx = jax.random.normal(kc, (B, S, D), dtype=jnp.float32)
    out4 = jax.block_until_ready(proj_add_norm(ctx, w, bias, x, gamma, beta))
    ref4 = proj_add_norm_ref(ctx, w, bias, x, gamma, beta)
    assert jnp.allclose(out4, ref4, atol=2e-2, rtol=2e-2)

    print("KERNEL_OK")
</pallas_src>

<mosaic_0001>
module attributes {stable_mosaic.version = 11 : i64} {
  func.func @addnorm_kernel(%arg0: i32, %arg1: memref<8x512xf32, #tpu.memory_space<vmem>>, %arg2: memref<8x512xf32, #tpu.memory_space<vmem>>, %arg3: memref<2x512xf32, #tpu.memory_space<vmem>>, %arg4: memref<8x512xf32, #tpu.memory_space<vmem>>) attributes {dimension_semantics = [#tpu.dimension_semantics<parallel>], iteration_bounds = array<i64: 2>, scalar_prefetch = 0 : i64, scratch_operands = 0 : i64, tpu.core_type = #tpu.core_type<tc>, window_params = [{transform_indices = @transform_0, window_bounds = array<i64: 8, 512>}, {transform_indices = @transform_1, window_bounds = array<i64: 8, 512>}, {pipeline_mode = #tpu.pipeline_mode<synchronous>, transform_indices = @transform_2, window_bounds = array<i64: 2, 512>}, {transform_indices = @transform_3, window_bounds = array<i64: 8, 512>}]} {
    %c0 = arith.constant 0 : index
    %c0_0 = arith.constant 0 : index
    %0 = vector.load %arg1[%c0, %c0_0] : memref<8x512xf32, #tpu.memory_space<vmem>>, vector<8x512xf32>
    %c0_1 = arith.constant 0 : index
    %c0_2 = arith.constant 0 : index
    %1 = vector.load %arg2[%c0_1, %c0_2] : memref<8x512xf32, #tpu.memory_space<vmem>>, vector<8x512xf32>
    %2 = arith.addf %0, %1 : vector<8x512xf32>
    %cst = arith.constant dense<0.000000e+00> : vector<8xf32>
    %3 = vector.multi_reduction <add>, %2, %cst [1] : vector<8x512xf32> to vector<8xf32>
    %4 = vector.shape_cast %3 : vector<8xf32> to vector<8x1xf32>
    %cst_3 = arith.constant 5.120000e+02 : f32
    %5 = vector.broadcast %cst_3 : f32 to vector<8x1xf32>
    %6 = arith.divf %4, %5 : vector<8x1xf32>
    %7 = arith.mulf %2, %2 : vector<8x512xf32>
    %cst_4 = arith.constant dense<0.000000e+00> : vector<8xf32>
    %8 = vector.multi_reduction <add>, %7, %cst_4 [1] : vector<8x512xf32> to vector<8xf32>
    %9 = vector.shape_cast %8 : vector<8xf32> to vector<8x1xf32>
    %cst_5 = arith.constant 5.120000e+02 : f32
    %10 = vector.broadcast %cst_5 : f32 to vector<8x1xf32>
    %11 = arith.divf %9, %10 : vector<8x1xf32>
    %12 = arith.mulf %6, %6 : vector<8x1xf32>
    %13 = arith.subf %11, %12 : vector<8x1xf32>
    %cst_6 = arith.constant 0.000000e+00 : f32
    %14 = vector.broadcast %cst_6 : f32 to vector<8x1xf32>
    %15 = arith.maximumf %13, %14 : vector<8x1xf32>
    %cst_7 = arith.constant 9.99999974E-6 : f32
    %16 = vector.broadcast %cst_7 : f32 to vector<8x1xf32>
    %17 = arith.addf %15, %16 : vector<8x1xf32>
    %18 = math.rsqrt %17 : vector<8x1xf32>
    %c0_8 = arith.constant 0 : index
    %c0_9 = arith.constant 0 : index
    %19 = vector.load %arg3[%c0_8, %c0_9] : memref<2x512xf32, #tpu.memory_space<vmem>>, vector<1x512xf32>
    %c1 = arith.constant 1 : index
    %c0_10 = arith.constant 0 : index
    %20 = vector.load %arg3[%c1, %c0_10] : memref<2x512xf32, #tpu.memory_space<vmem>>, vector<1x512xf32>
    %21 = vector.broadcast %6 : vector<8x1xf32> to vector<8x512xf32>
    %22 = arith.subf %2, %21 : vector<8x512xf32>
    %23 = vector.broadcast %18 : vector<8x1xf32> to vector<8x512xf32>
    %24 = vector.broadcast %19 : vector<1x512xf32> to vector<8x512xf32>
    %25 = arith.mulf %23, %24 : vector<8x512xf32>
    %26 = arith.mulf %22, %25 : vector<8x512xf32>
    %27 = vector.broadcast %20 : vector<1x512xf32> to vector<8x512xf32>
    %28 = arith.addf %26, %27 : vector<8x512xf32>
    %c0_11 = arith.constant 0 : index
    %c0_12 = arith.constant 0 : index
    %29 = vector.load %arg4[%c0_11, %c0_12] : memref<8x512xf32, #tpu.memory_space<vmem>>, vector<8x512xf32>
    tpu.vector_store %arg4[%c0_11, %c0_12], %28 {strides = array<i32>} : memref<8x512xf32, #tpu.memory_space<vmem>>, vector<8x512xf32>,
    return
  }
  func.func @transform_0(%arg0: i32) -> (i32, i32) {
    %c0_i32 = arith.constant 0 : i32
    %c0_i32_0 = arith.constant 0 : i32
    return %arg0, %c0_i32 : i32, i32
  }
  func.func @transform_1(%arg0: i32) -> (i32, i32) {
    %c0_i32 = arith.constant 0 : i32
    %c0_i32_0 = arith.constant 0 : i32
    return %arg0, %c0_i32 : i32, i32
  }
  func.func @transform_2(%arg0: i32) -> (i32, i32) {
    %c0_i32 = arith.constant 0 : i32
    %c0_i32_0 = arith.constant 0 : i32
    %c0_i32_1 = arith.constant 0 : i32
    return %c0_i32, %c0_i32_0 : i32, i32
  }
  func.func @transform_3(%arg0: i32) -> (i32, i32) {
    %c0_i32 = arith.constant 0 : i32
    %c0_i32_0 = arith.constant 0 : i32
    return %arg0, %c0_i32 : i32, i32
  }
}

</mosaic_0001>

<bundles_post_ra>
// kernel: tpu_custom_call.1
= control target key start
LH: loop header
LB: loop body
LE: loop exit
PB: predicated region body
PF: predicated region fallthrough
CT: control target
= control target key end

     0   :  { %8 = vsyncpa [#allocation3], 0  ;;  %s968_s0 = inlined_call_operand.hbm [shape: f32[16,512], index: 0, kind: input, shape index: {}]   ;;  %s969_s1 = inlined_call_operand.hbm [shape: f32[16,512], index: 1, kind: input, shape index: {}]   ;;  %s970_s2 = inlined_call_operand.hbm [shape: f32[2,512], index: 2, kind: input, shape index: {}]   ;;  %s971_s3 = inlined_call_operand.hbm [shape: f32[16,512], index: 3, kind: output, shape index: {}]  }
   0x1   :  { %10 = vsyncpa [#allocation3 + $0x1], 0 }
   0x2   :  { %11 = vsyncpa [#allocation6], 0 }
   0x3   :  { %13 = vsyncpa [#allocation6 + $0x1], 0 }
   0x4   :  { %14 = vsyncpa [#allocation4], 0 }
   0x5   :  { %16 = vsyncpa [#allocation4 + $0x1], 0  ;;  %s728_s12 = smov 0   ;;  %s730_s13 = smov 0  }
   0x6   :  { %s732_s14 = smov 0   ;;  %s734_s15 = smov 0  }
   0x7 LB: > { %s749_s16 = sadd.s32 4294967295, %s702_s15   ;;  %s453_s17 = sadd.s32 4294967294, %s702_s15   ;;  %s702_s15 = sphi %s734_s15, %s997_s15   ;;  %s698_s14 = sphi %s732_s14, %s996_s14   ;;  %s694_s13 = sphi %s730_s13, %s995_s13   ;;  %s690_s12 = sphi %s728_s12, %s994_s12  }
   0x8   : > { %p42_p0 = scmp.ne.s32.totalorder %s694_s13, %s690_s12  ;;  %p972_p1 = scmp.eq.s32.totalorder %s749_s16, 0 }
   0x9   : > { %p119_p3 = scmp.eq.s32.totalorder %s453_s17, 1  ;;  %p454_p5 = scmp.ge.s32.totalorder %s702_s15, 1 }
   0xa   : > { %p758_p4 = por %p972_p1, %p42_p0  ;;  %p126_p7 = scmp.lt.s32.totalorder %s702_s15, 3 }
   0xb   : > { %p763_p6 = por %p119_p3, %p42_p0  ;;  %s704_s21 = smov [#allocation7]  }
   0xc   : > { %s976_s18 = scalar_select %p758_p4, 1, 0 }
   0xd   : > { %s977_s19 = scalar_select %p763_p6, 1, 0 }
   0xe   : > { %p768_p8 = pnand %p454_p5, %p126_p7  ;;  %s139_s22 = sshll.u32 %s704_s21, 4  ;;  %s140_s22 = int_to_ptr.vmem [resolvable:$true] %s139_s22 }
   0xf   : > { %s776_s23 = sadd.s32 1, %s702_s15   ;;  %s29_s27 = sadd.s32 1, %s698_s14 }
  0x10   : > { %s978_s20 = scalar_select %p768_p8, 1, 0 }
  0x11   : > { %p486_p10 = pneg %p768_p8  ;;  %s26_s25 = ssub.s32 %s702_s15, %s776_s23 }
  0x12   : > { %p786_p12 = scmp.eq.s32.totalorder %s26_s25, 0  ;;  %s540_s30 = scalar_lea.hbm %s970_s2, 128 }
  0x13   : > { %p780_p11 = pnand %p486_p10, %p972_p1  ;;  %p541_p0 = scmp.ne.s32.totalorder %s970_s2, %s540_s30 }
  0x14   : > { %s980_s26 = scalar_select %p786_p12, 1, 0 }
  0x15   : > { %p542_p3 = pneg %p780_p11  ;;  %p547_p10 = scmp.lt.u32.totalorder %s540_s30, %s970_s2 }
  0x17   : > { %p543_p5 = pnand %p542_p3, %p541_p0 }
  0x19   : > { %p544_p7 = pneg %p543_p5 }
  0x1b   : > { %p549_p9 = pnand %p547_p10, %p544_p7 }
  0x1d   : > { %552 = shalt.err (!%p549_p9)
}
  0x1e   : > { %s553_s8 = scalar_lea.vmem %s140_s22, 128  ;;  %p561_p6 = scmp.lt.s32.totalorder %s140_s22, %s140_s22 }
  0x1f   : > { %p554_p1 = scmp.ne.s32.totalorder %s140_s22, %s553_s8  ;;  %p562_p4 = scmp.lt.s32.totalorder %s553_s8, %s553_s8 }
  0x21   : > { %p556_p2 = pnand %p554_p1, %p542_p3  ;;  %p563_p8 = por %p562_p4, %p561_p6 }
  0x23   : > { %p557_p13 = pneg %p556_p2 }
  0x25   : > { %p564_p12 = pnand %p563_p8, %p557_p13 }
  0x27   : > { %567 = shalt.err (!%p564_p12)
}
  0x28   : > { %489 = dma.hbm_to_vmem [thread:$0]  (!%p780_p11), %s970_s2, 128, %s140_s22, [#allocation6]  }
  0x29   : > { %p981_p1 = scmp.ne.s32.totalorder %s980_s26, 0  ;;  %p37_p2 = scmp.eq.s32.totalorder %s702_s15, 0 }
  0x2a   : > { %p982_p4 = scmp.ne.s32.totalorder %s698_s14, %s694_s13  ;;  %p983_p6 = scmp.eq.s32.totalorder %s749_s16, 1 }
  0x2b   : > { %s812_s11 = scalar_select %p981_p1, %s698_s14, %s29_s27  }
  0x2c   : > { %p820_p8 = por %p983_p6, %p982_p4  ;;  %p502_p9 = scmp.lt.s32.totalorder %s702_s15, 2 }
  0x2d   : > { %s150_s21 = sand.u32 1, %s698_s14   ;;  %p985_p12 = pmov %p982_p4 }
  0x2e   : > { %s984_s17 = scalar_select %p820_p8, 1, 0 }
  0x2f   : > { %p38_p13 = por %p37_p2, %p985_p12  ;;  %s829_s24 = sshll.u32 %s150_s21, 5 }
  0x30   : > { %s473_s25 = sshll.u32 %s702_s15, 9  ;;  %s154_s27 = scalar_lea.vmem [#allocation2], %s829_s24 }
  0x31   : > { %s835_s26 = scalar_lea.hbm %s968_s0, %s473_s25  ;;  %s162_s29 = sshll.u32 %s154_s27, 4  ;;  %s842_s29 = int_to_ptr.vmem [resolvable:$true] %s162_s29 }
  0x32   : > { %p838_p11 = pnand %p502_p9, %p38_p13  ;;  %s847_s6 = scalar_lea.hbm %s969_s1, %s473_s25 }
  0x33   : > { %s151_s7 = scalar_lea.sflag [#allocation3], %s150_s21  ;;  %s568_s8 = scalar_lea.hbm %s835_s26, 512 }
  0x34   : > { %p569_p0 = scmp.ne.s32.totalorder %s835_s26, %s568_s8  ;;  %p570_p3 = pneg %p838_p11 }
  0x35   : > { %s573_s28 = scalar_lea.hbm %s968_s0, 1024  ;;  %p574_p10 = scmp.lt.u32.totalorder %s835_s26, %s968_s0 }
  0x36   : > { %p571_p5 = pnand %p570_p3, %p569_p0  ;;  %p575_p1 = scmp.lt.u32.totalorder %s573_s28, %s568_s8 }
  0x37   : > { %p577_p4 = scmp.lt.u32.totalorder %s568_s8, %s835_s26 }
  0x38   : > { %p572_p7 = pneg %p571_p5  ;;  %p576_p2 = por %p575_p1, %p574_p10 }
  0x3a   : > { %p578_p6 = por %p577_p4, %p576_p2 }
  0x3c   : > { %p579_p9 = pnand %p578_p6, %p572_p7 }
  0x3e   : > { %582 = shalt.err (!%p579_p9)
}
  0x3f   : > { %s583_s21 = scalar_lea.vmem %s842_s29, 512  ;;  %s705_s25 = smov [#allocation2]  }
  0x40   : > { %p584_p12 = scmp.ne.s32.totalorder %s842_s29, %s583_s21  ;;  %s588_s4 = sshll.u32 %s705_s25, 4  ;;  %s589_s4 = int_to_ptr.vmem [resolvable:$false] %s588_s4 }
  0x41   : > { %s590_s5 = scalar_lea.vmem %s589_s4, 1024  ;;  %p591_p5 = scmp.lt.s32.totalorder %s842_s29, %s589_s4 }
  0x42   : > { %p586_p13 = pnand %p584_p12, %p570_p3  ;;  %p592_p10 = scmp.lt.s32.totalorder %s590_s5, %s583_s21 }
  0x44   : > { %p587_p0 = pneg %p586_p13  ;;  %p593_p1 = por %p592_p10, %p591_p5 }
  0x46   : > { %p594_p2 = pnand %p593_p1, %p587_p0 }
  0x48   : > { %597 = shalt.err (!%p594_p2)
}
  0x49   : > { %493 = dma.hbm_to_vmem [thread:$0]  (!%p838_p11), %s835_s26, 512, %s842_s29, %s151_s7  }
  0x4a   : > { %s169_s8 = sand.u32 1, %s702_s15   ;;  %s173_s9 = scalar_lea.vmem [#allocation5], %s829_s24 }
  0x4b   : > { %s181_s10 = sshll.u32 %s173_s9, 4  ;;  %s170_s28 = scalar_lea.sflag [#allocation6], %s169_s8  ;;  %s182_s10 = int_to_ptr.vmem [resolvable:$true] %s181_s10 }
  0x4c   : > { %s598_s22 = scalar_lea.hbm %s847_s6, 512  ;;  %s603_s25 = scalar_lea.hbm %s969_s1, 1024 }
  0x4d   : > { %p599_p7 = scmp.ne.s32.totalorder %s847_s6, %s598_s22  ;;  %p604_p9 = scmp.lt.u32.totalorder %s847_s6, %s969_s1 }
  0x4e   : > { %p605_p12 = scmp.lt.u32.totalorder %s603_s25, %s598_s22  ;;  %p607_p0 = scmp.lt.u32.totalorder %s598_s22, %s847_s6 }
  0x4f   : > { %p601_p4 = pnand %p599_p7, %p570_p3 }
  0x50   : > { %p606_p13 = por %p605_p12, %p604_p9 }
  0x51   : > { %p602_p6 = pneg %p601_p4 }
  0x52   : > { %p608_p5 = por %p607_p0, %p606_p13 }
  0x54   : > { %p609_p10 = pnand %p608_p5, %p602_p6 }
  0x56   : > { %612 = shalt.err (!%p609_p10)
}
  0x57   : > { %s613_s24 = scalar_lea.vmem %s182_s10, 512  ;;  %s706_s26 = smov [#allocation5]  }
  0x58   : > { %p614_p1 = scmp.ne.s32.totalorder %s182_s10, %s613_s24  ;;  %s618_s29 = sshll.u32 %s706_s26, 4  ;;  %s619_s29 = int_to_ptr.vmem [resolvable:$false] %s618_s29 }
  0x59   : > { %s620_s7 = scalar_lea.vmem %s619_s29, 1024  ;;  %p621_p4 = scmp.lt.s32.totalorder %s182_s10, %s619_s29 }
  0x5a   : > { %p616_p2 = pnand %p614_p1, %p570_p3  ;;  %p622_p8 = scmp.lt.s32.totalorder %s620_s7, %s613_s24 }
  0x5c   : > { %p617_p7 = pneg %p616_p2  ;;  %p623_p9 = por %p622_p8, %p621_p4 }
  0x5e   : > { %p624_p12 = pnand %p623_p9, %p617_p7 }
  0x60   : > { %627 = shalt.err (!%p624_p12)
}
  0x61   : > { %496 = dma.hbm_to_vmem [thread:$0]  (!%p838_p11), %s847_s6, 512, %s182_s10, %s170_s28  }
  0x62   : > { %p987_p6 = scmp.ne.s32.totalorder %s978_s20, 0 }
  0x63   : > { %s898_s8 = sand.u32 (!%p987_p6), 1, %s694_s13   ;;  %p988_p8 = scmp.ne.s32.totalorder (!%p987_p6), %s976_s18, 0 }
  0x64   : > { %190 = sbr.rel (%p987_p6) target bundleno = 311 (0x137), region = 32  ;;  %s901_s9 = sshll.u32 (!%p987_p6), %s898_s8, 5 }
  0x65   : > { %s193_s22 = scalar_lea.sflag (!%p987_p6), [#allocation3], %s898_s8  ;;  %s196_s27 = scalar_lea.vmem (!%p987_p6), [#allocation2], %s901_s9 }
  0x6b   : > { %673 = dma.done.wait (%p988_p8), %s193_s22, 512  }
  0x6c   : > { %675 = vsyncadd (%p988_p8), %s193_s22, 4294966784  ;;  %s201_s20 = sand.u32 1, %s749_s16   ;;  %s205_s6 = scalar_lea.vmem [#allocation5], %s901_s9 }
  0x6d   : > { %s202_s30 = scalar_lea.sflag [#allocation6], %s201_s20 }
  0x6e   : > { %677 = dma.done.wait (%p988_p8), %s202_s30, 512  }
  0x6f   : > { %679 = vsyncadd (%p988_p8), %s202_s30, 4294966784  ;;  %p989_p11 = scmp.eq.s32.totalorder %s749_s16, 0 }
  0x71   : > { %681 = dma.done.wait (%p989_p11), [#allocation6], 128   ;;  %p990_p3 = pmov %p989_p11 }
  0x72   : > { %v237_v0 = vld [vmem:[%s196_s27] sm:$0xff]  ;;  %v238_v1 = vld [vmem:[%s196_s27 + $0x8] sm:$0xff]  ;;  %v239_v2 = vld [vmem:[%s196_s27 + $0x10] sm:$0xff]  ;;  %v279_v28 = vlaneseq  ;;  %s475_s18 = sshll.u32 %s749_s16, 9  ;;  %s236_s10 = scalar_lea.vmem [#allocation8], %s901_s9 }
  0x73   : > { %683 = vsyncadd (%p990_p3), [#allocation6], 4294967168  ;;  %v240_v3 = vld [vmem:[%s196_s27 + $0x18] sm:$0xff]  ;;  %v241_v4 = vld [vmem:[%s205_s6] sm:$0xff]  ;;  %s351_s28 = sshll.u32 %s236_s10, 4  ;;  %s924_s4 = scalar_lea.hbm %s971_s3, %s475_s18  ;;  %s926_s28 = int_to_ptr.vmem [resolvable:$true] %s351_s28 }
  0x74   : > { %v242_v5 = vld [vmem:[%s205_s6 + $0x8] sm:$0xff]  ;;  %v243_v6 = vld [vmem:[%s205_s6 + $0x10] sm:$0xff]  ;;  %v244_v7 = vld [vmem:[%s205_s6 + $0x18] sm:$0xff]  ;;  %v245_v8 = vadd.f32 %v241_v4, %v237_v0  ;;  %v280_v31 = vshrl.u32 %v279_v28, 7  ;;  %s337_s16 = scalar_lea.sflag [#allocation4], %s898_s8  ;;  %s628_s5 = scalar_lea.vmem %s926_s28, 512 }
  0x75   : > { %v246_v9 = vadd.f32 %v242_v5, %v238_v1  ;;  %v247_v10 = vadd.f32 %v243_v6, %v239_v2  ;;  %v248_v11 = vadd.f32 %v244_v7, %v240_v3  ;;  %v271_v36 = vld [vmem:[#allocation7] ss:$2 sm:$0xf]  ;;  %v273_v37 = vld [vmem:[#allocation7 + $0x1] ss:$2 sm:$0xf]  ;;  %p629_p13 = scmp.ne.s32.totalorder %s926_s28, %s628_s5 }
  0x76   : > { %v256_v13 = vmul.f32 %v245_v8, %v245_v8  ;;  %v281_v32 = vsub.s32 0, %v280_v31  ;;  %v285_v33 = vsub.s32 1, %v280_v31  ;;  %v289_v34 = vsub.s32 2, %v280_v31  ;;  %p991_p0 = scmp.ne.s32.totalorder %s984_s17, 0  ;;  %s707_s24 = smov [#allocation8]  }
  0x77   : > { %v249_v12 = vadd.f32 %v246_v9, %v245_v8  ;;  %v257_v14 = vmul.f32 %v246_v9, %v246_v9  ;;  %v258_v15 = vmul.f32 %v247_v10, %v247_v10  ;;  %v259_v17 = vmul.f32 %v248_v11, %v248_v11  ;;  %s632_s26 = sshll.u32 %s707_s24, 4  ;;  %s633_s26 = int_to_ptr.vmem [resolvable:$false] %s632_s26 }
  0x78   : > { %v293_v35 = vsub.s32 3, %v280_v31  ;;  %v282_v38 = vrot.slane %v271_v36, %v281_v32  ;;  %v286_v39 = vrot.slane %v271_v36, %v285_v33  ;;  %v290_v40 = vrot.slane %v271_v36, %v289_v34  ;;  %p630_p5 = pnand %p629_p13, %p991_p0  ;;  %s634_s29 = scalar_lea.vmem %s633_s26, 1024 }
  0x79   : > { %v250_v16 = vadd.f32 %v249_v12, %v247_v10  ;;  %v260_v18 = vadd.f32 %v257_v14, %v256_v13  ;;  %v311_v42 = vrot.slane %v273_v37, %v281_v32  ;;  %v315_v43 = vrot.slane %v273_v37, %v285_v33  ;;  %p635_p1 = scmp.lt.s32.totalorder %s926_s28, %s633_s26  ;;  %p636_p2 = scmp.lt.s32.totalorder %s634_s29, %s628_s5 }
  0x7a   : > { %v294_v41 = vrot.slane %v271_v36, %v293_v35  ;;  %v319_v44 = vrot.slane %v273_v37, %v289_v34  ;;  %v323_v45 = vrot.slane %v273_v37, %v293_v35  ;;  %p631_p10 = pneg %p630_p5 }
  0x7b   : > { %v251_v19 = vadd.f32 %v250_v16, %v248_v11  ;;  %v261_v20 = vadd.f32 %v260_v18, %v258_v15  ;;  %p637_p7 = por %p636_p2, %p635_p1 }
  0x7d   : > { %252 = vadd.xlane.f32.xlu0 %v251_v19  ;;  %v262_v21 = vadd.f32 %v261_v20, %v259_v17  ;;  %p638_p4 = pnand %p637_p7, %p631_p10 }
  0x81   : > { %263 = vadd.xlane.f32.xlu0 %v262_v21 }
 0x10a   : > { %v253_v22 = vpop.xlane.xlu0 %252 }
 0x10b   : > { %v255_v23 = vmul.f32 0.001953125, %v253_v22 }
 0x10d   : > { %v266_v25 = vmul.f32 %v255_v23, %v255_v23  ;;  %v274_v47 = vsub.f32 %v245_v8, %v255_v23  ;;  %v275_v48 = vsub.f32 %v246_v9, %v255_v23  ;;  %v276_v49 = vsub.f32 %v247_v10, %v255_v23 }
 0x10e   : > { %v264_v24 = vpop.xlane.xlu0 %263  ;;  %v277_v50 = vsub.f32 %v248_v11, %v255_v23 }
 0x10f   : > { %v265_v26 = vmul.f32 0.001953125, %v264_v24 }
 0x111   : > { %v267_v27 = vsub.f32 %v265_v26, %v266_v25 }
 0x113   : > { %v268_v29 = vmax.f32 %v267_v27, 0.0 }
 0x115   : > { %v269_v30 = vadd.f32 1e-05, %v268_v29 }
 0x117   : > { %538 = vrsqrt.f32 %v269_v30 }
 0x121   : > { %v539_v46 = vpop.eup %538 }
 0x122   : > { %v299_v51 = vmul.f32 %v539_v46, %v282_v38  ;;  %v300_v52 = vmul.f32 %v539_v46, %v286_v39  ;;  %v301_v53 = vmul.f32 %v539_v46, %v290_v40  ;;  %v302_v54 = vmul.f32 %v539_v46, %v294_v41 }
 0x124   : > { %v303_v55 = vmul.f32 %v299_v51, %v274_v47  ;;  %v304_v56 = vmul.f32 %v300_v52, %v275_v48  ;;  %v305_v57 = vmul.f32 %v301_v53, %v276_v49  ;;  %v306_v58 = vmul.f32 %v302_v54, %v277_v50 }
 0x126   : > { %v328_v59 = vadd.f32 %v311_v42, %v303_v55  ;;  %v329_v60 = vadd.f32 %v315_v43, %v304_v56  ;;  %v330_v61 = vadd.f32 %v319_v44, %v305_v57  ;;  %v331_v62 = vadd.f32 %v323_v45, %v306_v58 }
 0x128   : > { %332 = vst [vmem:[%s236_s10] sm:$0xff] %v328_v59  ;;  %333 = vst [vmem:[%s236_s10 + $0x8] sm:$0xff] %v329_v60 }
 0x129   : > { %334 = vst [vmem:[%s236_s10 + $0x10] sm:$0xff] %v330_v61  ;;  %335 = vst [vmem:[%s236_s10 + $0x18] sm:$0xff] %v331_v62 }
 0x12a   : > { %641 = shalt.err (!%p638_p4)
}
 0x12b   : > { %s642_s7 = scalar_lea.hbm %s924_s4, 512  ;;  %s646_s22 = scalar_lea.hbm %s971_s3, 1024 }
 0x12c   : > { %p643_p9 = scmp.ne.s32.totalorder %s924_s4, %s642_s7  ;;  %p647_p8 = scmp.lt.u32.totalorder %s924_s4, %s971_s3 }
 0x12d   : > { %p648_p11 = scmp.lt.u32.totalorder %s646_s22, %s642_s7  ;;  %p650_p13 = scmp.lt.u32.totalorder %s642_s7, %s924_s4 }
 0x12e   : > { %p644_p12 = pnand %p643_p9, %p991_p0 }
 0x12f   : > { %p649_p3 = por %p648_p11, %p647_p8 }
 0x130   : > { %p645_p6 = pneg %p644_p12 }
 0x131   : > { %p651_p5 = por %p650_p13, %p649_p3 }
 0x133   : > { %p652_p10 = pnand %p651_p5, %p645_p6 }
 0x135   : > { %655 = shalt.err (!%p652_p10)
}
 0x136   : > { %484 = dma.vmem_to_hbm [thread:$0]  (%p991_p0), %s926_s28, 512, %s924_s4, %s337_s16  }
 0x137 PF: > { %s363_s30 = sand.u32 1, %s690_s12   ;;  %p992_p1 = scmp.ne.s32.totalorder %s977_s19, 0 }
 0x138   : > { %p993_p2 = scmp.ge.s32.totalorder %s702_s15, 2  ;;  %s364_s6 = scalar_lea.sflag [#allocation4], %s363_s30 }
 0x13a   : > { %p498_p7 = pnand %p993_p2, %p992_p1 }
 0x13c   : > { %685 = dma.done.wait (!%p498_p7), %s364_s6, 512  }
 0x13d   : > { %687 = vsyncadd (!%p498_p7), %s364_s6, 4294966784  ;;  %p19_p4 = scmp.ge.s32.totalorder %s776_s23, 4   ;;  %s994_s12 = smov %s694_s13 }
 0x13e   : > { %s995_s13 = smov %s698_s14  ;;  %s996_s14 = smov %s812_s11 }
 0x13f   : > { %s997_s15 = smov %s776_s23  ;;  %21 = sbr.rel (!%p19_p4) target bundleno = 7 (0x7), region = 95 }
 0x146   :  { %369 = vsyncpa [#allocation3], 1 }
 0x147   :  { %371 = vsyncpa [#allocation3 + $0x1], 1 }
 0x148   :  { %372 = vsyncpa [#allocation6], 1 }
 0x149   :  { %374 = vsyncpa [#allocation6 + $0x1], 1 }
 0x14a   :  { %375 = vsyncpa [#allocation4], 1 }
 0x14b   :  { %377 = vsyncpa [#allocation4 + $0x1], 1 }

</bundles_post_ra>
